<compile_context>
chip_gen: v7x
topology: tpu7x:2x2x1
jax: 0.10.0
libtpu: 0.0.40
codegen_flags: <defaults>
</compile_context>

<pallas_src>
import functools

import numpy as np
import jax
import jax.numpy as jnp
from jax.experimental import pallas as pl
from jax.experimental.pallas import tpu as pltpu


def _round_up(x, m):
    return (x + m - 1) // m * m


# ---------------------------------------------------------------------------
# Pallas kernel: fused im2col-GEMM + bias  (out_tile = patches_tile @ W + b)
# ---------------------------------------------------------------------------
def _conv_gemm_kernel(p_ref, w_ref, b_ref, o_ref):
    o_ref[...] = (
        jnp.dot(p_ref[...], w_ref[...], preferred_element_type=jnp.float32)
        + b_ref[...]
    )


def conv2d_pallas(x, weight, bias, *, stride=1, padding=0, tile_m=128):
    """Forward pass of the reference custom Conv module.

    x:      (B, Cin, H, W)  float32
    weight: (Cout, Cin, K, K) float32
    bias:   (Cout,)          float32
    returns (B, Cout, OH, OW) float32
    """
    if x.ndim != 4:
        raise Exception("Batch should be 4 dimensional")
    B, Cin, H, W = x.shape
    Cout, _, K, _ = weight.shape
    if H != W:
        raise Exception("Only processing square Image")

    # TODO(synk): reference computes output size from the UNPADDED input with the
    # stride formula, yet slides the window with step 1 over the PADDED input;
    # reproduced faithfully (not a "standard" conv when padding>0 or stride>1).
    OH = int((H - K) / stride + 1)
    OW = int((W - K) / stride + 1)

    # --- host-side (XLA, fused in jit): NHWC + zero-pad + im2col patches ------
    x_nhwc = jnp.transpose(x, (0, 2, 3, 1))
    xpad = jnp.pad(
        x_nhwc, ((0, 0), (padding, padding), (padding, padding), (0, 0))
    )
    patches = jnp.concatenate(
        [xpad[:, kh:kh + OH, kw:kw + OW, :] for kh in range(K) for kw in range(K)],
        axis=-1,
    ).reshape(B * OH * OW, K * K * Cin)

    # weight (Cout, Cin, K, K) -> (K, K, Cin, Cout) -> (K*K*Cin, Cout)
    w2d = jnp.transpose(weight, (2, 3, 1, 0)).reshape(K * K * Cin, Cout)

    # --- pad to MXU/vreg-friendly (8,128)-aligned tiles ------------------------
    M, Kdim = patches.shape
    Mp = _round_up(M, tile_m)
    Kp = _round_up(Kdim, 128)
    Np = _round_up(Cout, 128)

    patches_p = jnp.zeros((Mp, Kp), jnp.float32).at[:M, :Kdim].set(patches)
    w_p = jnp.zeros((Kp, Np), jnp.float32).at[:Kdim, :Cout].set(w2d)
    b_p = jnp.zeros((1, Np), jnp.float32).at[0, :Cout].set(bias)

    # --- single fused Pallas GEMM + bias ---------------------------------------
    out_p = pl.pallas_call(
        _conv_gemm_kernel,
        out_shape=jax.ShapeDtypeStruct((Mp, Np), jnp.float32),
        grid_spec=pltpu.PrefetchScalarGridSpec(
            num_scalar_prefetch=0,
            grid=(Mp // tile_m,),
            in_specs=[
                pl.BlockSpec((tile_m, Kp), lambda i: (i, 0)),   # patch row tile
                pl.BlockSpec((Kp, Np), lambda i: (0, 0)),       # full weight
                pl.BlockSpec((1, Np), lambda i: (0, 0)),        # bias row
            ],
            out_specs=pl.BlockSpec((tile_m, Np), lambda i: (i, 0)),
        ),
        compiler_params=pltpu.CompilerParams(
            dimension_semantics=("parallel",),
        ),
    )(patches_p, w_p, b_p)

    out = out_p[:M, :Cout].reshape(B, OH, OW, Cout)
    return jnp.transpose(out, (0, 3, 1, 2))  # NCHW, matching the reference


if __name__ == "__main__":
    # Small, deterministic example consistent with the module.
    B, Cin, H, W = 2, 3, 16, 16
    Cout, K = 8, 3
    stride, padding = 1, 1

    key = jax.random.PRNGKey(0)
    kx, kw, kb = jax.random.split(key, 3)
    x = jax.random.normal(kx, (B, Cin, H, W), jnp.float32)
    weight = 0.1 * jax.random.normal(kw, (Cout, Cin, K, K), jnp.float32)
    bias = 0.1 * jax.random.normal(kb, (Cout,), jnp.float32)

    conv_fn = jax.jit(functools.partial(conv2d_pallas, stride=stride, padding=padding))
    out = jax.block_until_ready(conv_fn(x, weight, bias))

    # Expected output shape per the reference formula.
    OH = int((H - K) / stride + 1)
    OW = int((W - K) / stride + 1)
    assert out.shape == (B, Cout, OH, OW)
    assert bool(jnp.all(jnp.isfinite(out)))

    # Numerical check: stride-1 conv over the padded input, top-left OHxOW corner
    # (== the reference module's quirky windowing), plus bias.
    ref_full = jax.lax.conv_general_dilated(
        x, weight, window_strides=(1, 1),
        padding=((padding, padding), (padding, padding)),
        dimension_numbers=("NCHW", "OIHW", "NCHW"),
        precision=jax.lax.Precision.HIGHEST,
    )
    ref = ref_full[:, :, :OH, :OW] + bias[None, :, None, None]
    np.testing.assert_allclose(np.asarray(out), np.asarray(ref), rtol=1e-2, atol=1e-2)

    print("KERNEL_OK")
</pallas_src>

<mosaic_0001>
module attributes {stable_mosaic.version = 11 : i64} {
  func.func @_conv_gemm_kernel(%arg0: i32, %arg1: memref<128x128xf32, #tpu.memory_space<vmem>>, %arg2: memref<128x128xf32, #tpu.memory_space<vmem>>, %arg3: memref<1x128xf32, #tpu.memory_space<vmem>>, %arg4: memref<128x128xf32, #tpu.memory_space<vmem>>) attributes {dimension_semantics = [#tpu.dimension_semantics<parallel>], iteration_bounds = array<i64: 4>, scalar_prefetch = 0 : i64, scratch_operands = 0 : i64, tpu.core_type = #tpu.core_type<tc>, window_params = [{transform_indices = @transform_0, window_bounds = array<i64: 128, 128>}, {pipeline_mode = #tpu.pipeline_mode<synchronous>, transform_indices = @transform_1, window_bounds = array<i64: 128, 128>}, {pipeline_mode = #tpu.pipeline_mode<synchronous>, transform_indices = @transform_2, window_bounds = array<i64: 1, 128>}, {transform_indices = @transform_3, window_bounds = array<i64: 128, 128>}]} {
    %c0 = arith.constant 0 : index
    %c0_0 = arith.constant 0 : index
    %0 = vector.load %arg1[%c0, %c0_0] : memref<128x128xf32, #tpu.memory_space<vmem>>, vector<128x128xf32>
    %c0_1 = arith.constant 0 : index
    %c0_2 = arith.constant 0 : index
    %1 = vector.load %arg2[%c0_1, %c0_2] : memref<128x128xf32, #tpu.memory_space<vmem>>, vector<128x128xf32>
    %cst = arith.constant dense<0.000000e+00> : vector<128x128xf32>
    %2 = tpu.matmul %0, %1, %cst {dimension_numbers = #tpu.dot_dimension_numbers<[1], [0], [0], [1], [0, 0, 1, 1], [], []>} : vector<128x128xf32>, vector<128x128xf32>, vector<128x128xf32> -> vector<128x128xf32>
    %c0_3 = arith.constant 0 : index
    %c0_4 = arith.constant 0 : index
    %3 = vector.load %arg3[%c0_3, %c0_4] : memref<1x128xf32, #tpu.memory_space<vmem>>, vector<1x128xf32>
    %4 = vector.broadcast %3 : vector<1x128xf32> to vector<128x128xf32>
    %5 = arith.addf %2, %4 : vector<128x128xf32>
    %c0_5 = arith.constant 0 : index
    %c0_6 = arith.constant 0 : index
    %6 = vector.load %arg4[%c0_5, %c0_6] : memref<128x128xf32, #tpu.memory_space<vmem>>, vector<128x128xf32>
    tpu.vector_store %arg4[%c0_5, %c0_6], %5 {strides = array<i32>} : memref<128x128xf32, #tpu.memory_space<vmem>>, vector<128x128xf32>,
    return
  }
  func.func @transform_0(%arg0: i32) -> (i32, i32) {
    %c0_i32 = arith.constant 0 : i32
    %c0_i32_0 = arith.constant 0 : i32
    return %arg0, %c0_i32 : i32, i32
  }
  func.func @transform_1(%arg0: i32) -> (i32, i32) {
    %c0_i32 = arith.constant 0 : i32
    %c0_i32_0 = arith.constant 0 : i32
    %c0_i32_1 = arith.constant 0 : i32
    return %c0_i32, %c0_i32_0 : i32, i32
  }
  func.func @transform_2(%arg0: i32) -> (i32, i32) {
    %c0_i32 = arith.constant 0 : i32
    %c0_i32_0 = arith.constant 0 : i32
    %c0_i32_1 = arith.constant 0 : i32
    return %c0_i32, %c0_i32_0 : i32, i32
  }
  func.func @transform_3(%arg0: i32) -> (i32, i32) {
    %c0_i32 = arith.constant 0 : i32
    %c0_i32_0 = arith.constant 0 : i32
    return %arg0, %c0_i32 : i32, i32
  }
}

</mosaic_0001>

<bundles_post_ra>
// kernel: conv2d_pallas.1
= control target key start
LH: loop header
LB: loop body
LE: loop exit
PB: predicated region body
PF: predicated region fallthrough
CT: control target
= control target key end

     0   :  { %s614_s12 = smov 0   ;;  %s725_s0 = inlined_call_operand.vmem [shape: f32[512,128], index: 0, kind: input, shape index: {}]   ;;  %s726_s1 = inlined_call_operand.vmem [shape: f32[128,128], index: 1, kind: input, shape index: {}]   ;;  %s727_s2 = inlined_call_operand.vmem [shape: f32[1,128], index: 2, kind: input, shape index: {}]   ;;  %s728_s3 = inlined_call_operand.vmem [shape: f32[512,128], index: 3, kind: output, shape index: {}]  }
   0x1 LB: > { %s430_s13 = sadd.s32 4294967295, %s592_s12   ;;  %p434_p0 = scmp.ge.s32.totalorder %s592_s12, 1  ;;  %s592_s12 = sphi %s614_s12, %s13_s12  }
   0x2   : > { %p138_p1 = scmp.lt.s32.totalorder %s592_s12, 5 }
   0x4   : > { %p139_p2 = pnand %p434_p0, %p138_p1 }
   0x5   : > { %v190_v0 = vld [vmem:[%s726_s1] sm:$0xff] (!%p139_p2)  ;;  %v191_v1 = vld [vmem:[%s726_s1 + $0x8] sm:$0xff] (!%p139_p2)  ;;  %v192_v2 = vld [vmem:[%s726_s1 + $0x10] sm:$0xff] (!%p139_p2)  ;;  %s435_s20 = sshll.u32 (!%p139_p2), %s430_s13, 4 }
   0x6   : > { %142 = sbr.rel (%p139_p2) target bundleno = 269 (0x10d), region = 32  ;;  %v530_v3 = vpack.c.bf16 (!%p139_p2), %v191_v1, %v190_v0  ;;  %v193_v4 = vld [vmem:[%s726_s1 + $0x18] sm:$0xff] (!%p139_p2)  ;;  %p163_p3 = scmp.lt.s32.totalorder (!%p139_p2), %s435_s20, 63  ;;  %v194_v6 = vld [vmem:[%s726_s1 + $0x20] sm:$0xff] (!%p139_p2)  ;;  %v195_v7 = vld [vmem:[%s726_s1 + $0x28] sm:$0xff] (!%p139_p2) }
   0x7   : > { %v534_v5 = vpack.c.bf16 (!%p139_p2), %v193_v4, %v192_v2  ;;  %v538_v8 = vpack.c.bf16 (!%p139_p2), %v195_v7, %v194_v6  ;;  %v196_v9 = vld [vmem:[%s726_s1 + $0x30] sm:$0xff] (!%p139_p2)  ;;  %v197_v10 = vld [vmem:[%s726_s1 + $0x38] sm:$0xff] (!%p139_p2)  ;;  %v198_v14 = vld [vmem:[%s726_s1 + $0x40] sm:$0xff] (!%p139_p2) }
   0x8   : > { %531 = vmatprep.subr.bf16.mxu0 (!%p139_p2), %v530_v3  ;;  %562 = vmatprep.subr.bf16.mxu1 (!%p139_p2), %v530_v3  ;;  %v542_v13 = vpack.c.bf16 (!%p139_p2), %v197_v10, %v196_v9  ;;  %v199_v15 = vld [vmem:[%s726_s1 + $0x48] sm:$0xff] (!%p139_p2)  ;;  %v200_v17 = vld [vmem:[%s726_s1 + $0x50] sm:$0xff] (!%p139_p2)  ;;  %v201_v18 = vld [vmem:[%s726_s1 + $0x58] sm:$0xff] (!%p139_p2) }
   0x9   : > { %533 = vmatpush3.bf16.msra.mxu0 (!%p139_p2), %v530_v3  ;;  %570 = vmatpush3.bf16.msra.mxu1 (!%p139_p2), %v530_v3  ;;  %v546_v16 = vpack.c.bf16 (!%p139_p2), %v199_v15, %v198_v14  ;;  %v550_v19 = vpack.c.bf16 (!%p139_p2), %v201_v18, %v200_v17  ;;  %v202_v20 = vld [vmem:[%s726_s1 + $0x60] sm:$0xff] (!%p139_p2)  ;;  %v203_v21 = vld [vmem:[%s726_s1 + $0x68] sm:$0xff] (!%p139_p2)  ;;  %v204_v23 = vld [vmem:[%s726_s1 + $0x70] sm:$0xff] (!%p139_p2) }
   0xa   : > { %535 = vmatprep.subr.bf16.mxu0 (!%p139_p2), %v534_v5  ;;  %563 = vmatprep.subr.bf16.mxu1 (!%p139_p2), %v534_v5  ;;  %v554_v22 = vpack.c.bf16 (!%p139_p2), %v203_v21, %v202_v20  ;;  %v205_v24 = vld [vmem:[%s726_s1 + $0x78] sm:$0xff] (!%p139_p2)  ;;  %v439_v40 = vld [vmem:[%s727_s2] ss:$0 sm:$0xff] (!%p139_p2) }
   0xb   : > { %v558_v25 = vpack.c.bf16 (!%p139_p2), %v205_v24, %v204_v23 }
   0xd   : > { %s730_s20 = smov (!%p163_p3, %s435_s20), 63  ;;  %537 = vmatpush3.bf16.msra.mxu0 %v534_v5  ;;  %571 = vmatpush3.bf16.msra.mxu1 %v534_v5 }
   0xe   : > { %s436_s27 = sshll.u32 %s730_s20, 3  ;;  %539 = vmatprep.subr.bf16.mxu0 %v538_v8  ;;  %564 = vmatprep.subr.bf16.mxu1 %v538_v8 }
   0xf   : > { %s654_s7 = scalar_lea.vmem %s725_s0, %s436_s27  ;;  %s704_s4 = scalar_lea.vmem %s728_s3, %s436_s27 }
  0x10   : > { %v174_v11 = vld [vmem:[%s654_s7] sm:$0xff]  ;;  %v175_v26 = vld [vmem:[%s654_s7 + $0x8] sm:$0xff]  ;;  %v176_v28 = vld [vmem:[%s654_s7 + $0x10] sm:$0xff] }
  0x11   : > { %v182_v12 = vld [vmem:[%s654_s7 + $0x40] sm:$0xff]  ;;  %506 = vmatprep.mubr.f32.mxu0 %v174_v11  ;;  %541 = vmatpush3.bf16.msra.mxu0 %v538_v8  ;;  %v183_v27 = vld [vmem:[%s654_s7 + $0x48] sm:$0xff]  ;;  %v184_v29 = vld [vmem:[%s654_s7 + $0x50] sm:$0xff] }
  0x12   : > { %518 = vmatprep.mubr.f32.mxu1 %v182_v12  ;;  %572 = vmatpush3.bf16.msra.mxu1 %v538_v8  ;;  %v177_v30 = vld [vmem:[%s654_s7 + $0x18] sm:$0xff]  ;;  %v178_v32 = vld [vmem:[%s654_s7 + $0x20] sm:$0xff]  ;;  %v179_v34 = vld [vmem:[%s654_s7 + $0x28] sm:$0xff] }
  0x13   : > { %543 = vmatprep.subr.bf16.mxu0 %v542_v13  ;;  %565 = vmatprep.subr.bf16.mxu1 %v542_v13  ;;  %v185_v31 = vld [vmem:[%s654_s7 + $0x58] sm:$0xff]  ;;  %v186_v33 = vld [vmem:[%s654_s7 + $0x60] sm:$0xff]  ;;  %v187_v35 = vld [vmem:[%s654_s7 + $0x68] sm:$0xff] }
  0x14   : > { %v180_v36 = vld [vmem:[%s654_s7 + $0x30] sm:$0xff]  ;;  %v181_v38 = vld [vmem:[%s654_s7 + $0x38] sm:$0xff] }
  0x15   : > { %545 = vmatpush3.bf16.msra.mxu0 %v542_v13  ;;  %v188_v37 = vld [vmem:[%s654_s7 + $0x70] sm:$0xff]  ;;  %v189_v39 = vld [vmem:[%s654_s7 + $0x78] sm:$0xff] }
  0x16   : > { %573 = vmatpush3.bf16.msra.mxu1 %v542_v13  ;;  %547 = vmatprep.subr.bf16.mxu0 %v546_v16 }
  0x17   : > { %566 = vmatprep.subr.bf16.mxu1 %v546_v16 }
  0x19   : > { %549 = vmatpush3.bf16.msra.mxu0 %v546_v16 }
  0x1a   : > { %574 = vmatpush3.bf16.msra.mxu1 %v546_v16  ;;  %551 = vmatprep.subr.bf16.mxu0 %v550_v19 }
  0x1b   : > { %567 = vmatprep.subr.bf16.mxu1 %v550_v19 }
  0x1d   : > { %553 = vmatpush3.bf16.msra.mxu0 %v550_v19 }
  0x1e   : > { %575 = vmatpush3.bf16.msra.mxu1 %v550_v19  ;;  %555 = vmatprep.subr.bf16.mxu0 %v554_v22 }
  0x1f   : > { %568 = vmatprep.subr.bf16.mxu1 %v554_v22 }
  0x21   : > { %557 = vmatpush3.bf16.msra.mxu0 %v554_v22 }
  0x22   : > { %576 = vmatpush3.bf16.msra.mxu1 %v554_v22  ;;  %559 = vmatprep.subr.bf16.mxu0 %v558_v25 }
  0x23   : > { %569 = vmatprep.subr.bf16.mxu1 %v558_v25 }
  0x25   : > { %561 = vmatpush3.bf16.msra.mxu0 %v558_v25 }
  0x26   : > { %577 = vmatpush3.bf16.msra.mxu1 %v558_v25 }
  0x28   : > { %507 = vmatmul.mubr.f32.vlgmr.msra.gmra.mrb[0].mxu0 %v175_v26 }
  0x29   : > { %519 = vmatmul.mubr.f32.vlgmr.msra.gmra.mrb[0].mxu1 %v183_v27  ;;  %509 = vmatprep.mubr.f32.mxu0 %v176_v28 }
  0x2a   : > { %521 = vmatprep.mubr.f32.mxu1 %v184_v29 }
  0x2c   : > { %510 = vmatmul.mubr.f32.gmra.mrb[2].mxu0 %v177_v30 }
  0x2d   : > { %522 = vmatmul.mubr.f32.gmra.mrb[2].mxu1 %v185_v31  ;;  %512 = vmatprep.mubr.f32.mxu0 %v178_v32 }
  0x2e   : > { %524 = vmatprep.mubr.f32.mxu1 %v186_v33 }
  0x30   : > { %513 = vmatmul.mubr.f32.gmra.mrb[4].mxu0 %v179_v34 }
  0x31   : > { %525 = vmatmul.mubr.f32.gmra.mrb[4].mxu1 %v187_v35  ;;  %515 = vmatprep.mubr.f32.mxu0 %v180_v36 }
  0x32   : > { %527 = vmatprep.mubr.f32.mxu1 %v188_v37 }
  0x34   : > { %516 = vmatmul.mubr.f32.gmra.mrb[6].mxu0 %v181_v38 }
  0x35   : > { %528 = vmatmul.mubr.f32.gmra.mrb[6].mxu1 %v189_v39 }
  0xfb   : > { %v508_v41 = vpop.f32.mrb[0].mxu0 }
  0xfc   : > { %v520_v42 = vpop.f32.mrb[0].mxu1  ;;  %v285_v43 = vadd.f32 %v508_v41, %v439_v40  ;;  %v279_v45 = vpop.f32.mrb[1].mxu0 }
  0xfd   : > { %v325_v44 = vadd.f32 %v520_v42, %v439_v40  ;;  %v319_v46 = vpop.f32.mrb[1].mxu1  ;;  %v280_v47 = vadd.f32 %v439_v40, %v279_v45 }
  0xfe   : > { %v320_v48 = vadd.f32 %v439_v40, %v319_v46  ;;  %359 = vst [vmem:[%s704_s4 + $0x8] sm:$0xff] %v285_v43 }
  0xff   : > { %367 = vst [vmem:[%s704_s4 + $0x48] sm:$0xff] %v325_v44  ;;  %358 = vst [vmem:[%s704_s4] sm:$0xff] %v280_v47  ;;  %v511_v49 = vpop.f32.mrb[2].mxu0 }
 0x100   : > { %366 = vst [vmem:[%s704_s4 + $0x40] sm:$0xff] %v320_v48  ;;  %v523_v50 = vpop.f32.mrb[2].mxu1  ;;  %v295_v51 = vadd.f32 %v511_v49, %v439_v40  ;;  %v289_v53 = vpop.f32.mrb[3].mxu0 }
 0x101   : > { %v335_v52 = vadd.f32 %v523_v50, %v439_v40  ;;  %v329_v54 = vpop.f32.mrb[3].mxu1  ;;  %v290_v55 = vadd.f32 %v439_v40, %v289_v53 }
 0x102   : > { %v330_v56 = vadd.f32 %v439_v40, %v329_v54  ;;  %361 = vst [vmem:[%s704_s4 + $0x18] sm:$0xff] %v295_v51 }
 0x103   : > { %369 = vst [vmem:[%s704_s4 + $0x58] sm:$0xff] %v335_v52  ;;  %360 = vst [vmem:[%s704_s4 + $0x10] sm:$0xff] %v290_v55  ;;  %v514_v57 = vpop.f32.mrb[4].mxu0 }
 0x104   : > { %368 = vst [vmem:[%s704_s4 + $0x50] sm:$0xff] %v330_v56  ;;  %v526_v58 = vpop.f32.mrb[4].mxu1  ;;  %v305_v59 = vadd.f32 %v514_v57, %v439_v40  ;;  %v299_v61 = vpop.f32.mrb[5].mxu0 }
 0x105   : > { %v345_v60 = vadd.f32 %v526_v58, %v439_v40  ;;  %v339_v62 = vpop.f32.mrb[5].mxu1  ;;  %v300_v63 = vadd.f32 %v439_v40, %v299_v61 }
 0x106   : > { %v340_v0 = vadd.f32 %v439_v40, %v339_v62  ;;  %363 = vst [vmem:[%s704_s4 + $0x28] sm:$0xff] %v305_v59 }
 0x107   : > { %371 = vst [vmem:[%s704_s4 + $0x68] sm:$0xff] %v345_v60  ;;  %362 = vst [vmem:[%s704_s4 + $0x20] sm:$0xff] %v300_v63  ;;  %v517_v1 = vpop.f32.mrb[6].mxu0 }
 0x108   : > { %370 = vst [vmem:[%s704_s4 + $0x60] sm:$0xff] %v340_v0  ;;  %v529_v2 = vpop.f32.mrb[6].mxu1  ;;  %v315_v3 = vadd.f32 %v517_v1, %v439_v40  ;;  %v309_v5 = vpop.f32.mrb[7].mxu0 }
 0x109   : > { %v355_v4 = vadd.f32 %v529_v2, %v439_v40  ;;  %v349_v6 = vpop.f32.mrb[7].mxu1  ;;  %v310_v7 = vadd.f32 %v439_v40, %v309_v5 }
 0x10a   : > { %v350_v8 = vadd.f32 %v439_v40, %v349_v6  ;;  %365 = vst [vmem:[%s704_s4 + $0x38] sm:$0xff] %v315_v3 }
 0x10b   : > { %373 = vst [vmem:[%s704_s4 + $0x78] sm:$0xff] %v355_v4  ;;  %364 = vst [vmem:[%s704_s4 + $0x30] sm:$0xff] %v310_v7 }
 0x10c   : > { %372 = vst [vmem:[%s704_s4 + $0x70] sm:$0xff] %v350_v8 }
 0x10d PF: > { %s13_s12 = sadd.s32 1, %s592_s12  }
 0x10e   : > { %p10_p4 = scmp.ge.s32.totalorder %s13_s12, 6  }
 0x110   :  { %12 = sbr.rel (!%p10_p4) target bundleno = 1 (0x1), region = 62 }

</bundles_post_ra>
